<compile_context>
chip_gen: v7x
topology: tpu7x:2x2x1
jax: 0.10.0
libtpu: 0.0.40
codegen_flags: <defaults>
</compile_context>

<pallas_src>
import functools

import jax
import jax.numpy as jnp
from jax import lax
from jax.experimental import pallas as pl
from jax.experimental.pallas import tpu as pltpu

LN_EPS = 1e-5


# --------------------------------------------------------------------------------------
# Kernel 1: LayerNorm-1 (gamma/beta folded into the weights) + fused QKV projection.
# --------------------------------------------------------------------------------------
def ln1_qkv_kernel(x_ref, wqkv_ref, bqkv_ref, q_ref, kv_ref):
    # x_ref   : (1, tq, C) f32      residual-stream rows
    # wqkv_ref: (C, 3C)    bf16     [scale*g1*Wq^T | g1*Wk^T | g1*Wv^T]
    # bqkv_ref: (1, 3C)    f32      [scale*b1@Wq^T | b1@Wk^T | b1@Wv^T]
    # q_ref   : (1, tq, C) bf16     pre-scaled queries
    # kv_ref  : (1, tq, 2C) bf16    keys | values
    C = x_ref.shape[2]
    xf = x_ref[0].astype(jnp.float32)
    mu = jnp.mean(xf, axis=-1, keepdims=True)
    xc = xf - mu
    var = jnp.mean(xc * xc, axis=-1, keepdims=True)
    xn = (xc * lax.rsqrt(var + LN_EPS)).astype(wqkv_ref.dtype)   # gamma/beta folded into wqkv

    qkv = jnp.dot(xn, wqkv_ref[...], preferred_element_type=jnp.float32) + bqkv_ref[0]
    qkv = qkv.astype(q_ref.dtype)
    q_ref[0] = qkv[:, :C]
    kv_ref[0] = qkv[:, C:]


# --------------------------------------------------------------------------------------
# Kernel 2: causal MHA + residual + LayerNorm-2 (folded) + FFN + residual.
# --------------------------------------------------------------------------------------
def attn_ffn_kernel(x_ref, q_ref, kv_ref, wpt_ref, bp_ref,
                    w1t_ref, fb1_ref, w2t_ref, fb2_ref,
                    o_ref, att_sc, *, n_heads, hidden_chunk):
    # x_ref  : (1, tq, C) f32   residual rows for this query block
    # q_ref  : (1, tq, C) bf16  queries (softmax scale + LN1 affine already folded)
    # kv_ref : (1, T, 2C) bf16  full-sequence keys | values of this batch element
    # wpt_ref: (C, C) bf16  Wp^T ;  bp_ref: (1, C) f32
    # w1t_ref: (C, 4C) bf16 (LN2 gamma folded) ; fb1_ref: (1, 4C) f32 (LN2 beta folded)
    # w2t_ref: (4C, C) bf16 ; fb2_ref: (1, C) f32
    # o_ref  : (1, tq, C)
    # att_sc : (tq, C) bf16 VMEM scratch for head-concatenated attention output
    tq, C = x_ref.shape[1], x_ref.shape[2]
    T = kv_ref.shape[1]
    hs = C // n_heads
    cdt = q_ref.dtype
    q0 = pl.program_id(1) * tq                      # global row offset of this query block

    # Causal mask for this query block (hoisted out of the head loop).
    rows = q0 + lax.broadcasted_iota(jnp.int32, (tq, T), 0)
    cols = lax.broadcasted_iota(jnp.int32, (tq, T), 1)
    causal = cols <= rows

    q_all = q_ref[0]                                # (tq, C) bf16
    kv = kv_ref[0]                                  # (T, 2C) bf16

    # TODO(synk): lax.fori_loop + pl.ds head slices for production-sized n_heads.
    for h in range(n_heads):
        q_h = q_all[:, h * hs:(h + 1) * hs]
        k_h = kv[:, h * hs:(h + 1) * hs]
        v_h = kv[:, C + h * hs:C + (h + 1) * hs]
        # q @ k^T without materializing k.T: contract the hs axes directly.
        s = lax.dot_general(q_h, k_h, (((1,), (1,)), ((), ())),
                            preferred_element_type=jnp.float32)            # (tq, T) f32
        s = jnp.where(causal, s, jnp.float32(-1e30))                        # finite mask (NaN-safe)
        m = jnp.max(s, axis=-1, keepdims=True)
        e = jnp.exp(s - m)
        l = jnp.sum(e, axis=-1, keepdims=True)
        p = (e * pl.reciprocal(l, approx=True)).astype(cdt)                 # EUP reciprocal
        # Write this head's output straight into its column slab of the scratch.
        att_sc[:, h * hs:(h + 1) * hs] = jnp.dot(
            p, v_h, preferred_element_type=jnp.float32).astype(cdt)

    # Single C-deep output projection over all heads at once.
    proj = jnp.dot(att_sc[...], wpt_ref[...], preferred_element_type=jnp.float32)
    x1 = x_ref[0].astype(jnp.float32) + proj + bp_ref[0]                    # residual (f32)

    # LayerNorm 2 (gamma/beta folded into w1t/fb1).
    mu = jnp.mean(x1, axis=-1, keepdims=True)
    xc = x1 - mu
    var = jnp.mean(xc * xc, axis=-1, keepdims=True)
    xn2 = (xc * lax.rsqrt(var + LN_EPS)).astype(cdt)

    # FFN: Linear(C,4C) -> ReLU -> Linear(4C,C), chunked over the hidden dim.
    hidden = w1t_ref.shape[1]
    ffn = jnp.zeros((tq, C), jnp.float32)
    for c0 in range(0, hidden, hidden_chunk):
        c1 = min(c0 + hidden_chunk, hidden)
        h1 = jnp.dot(xn2, w1t_ref[:, c0:c1], preferred_element_type=jnp.float32)
        h1 = jnp.maximum(h1 + fb1_ref[0, c0:c1], 0.0).astype(cdt)
        ffn = ffn + jnp.dot(h1, w2t_ref[c0:c1, :], preferred_element_type=jnp.float32)

    o_ref[0] = (x1 + ffn + fb2_ref[0]).astype(o_ref.dtype)


# --------------------------------------------------------------------------------------
# One-time parameter packing (hoisted out of the per-call forward path).
# --------------------------------------------------------------------------------------
def pack_block_params(g1, b1, wq, wk, wv, wp, bp, g2, b2, w1, fb1, w2, fb2,
                      compute_dtype=jnp.bfloat16):
    C = g1.shape[0]
    H, hs, _ = wq.shape
    hidden = w1.shape[0]
    scale = C ** (-0.5)          # NOTE: reference scales by n_embed (C), not head_size

    def stack(w):                # (H, hs, C) -> (C, H*hs); column h*hs+d is head h, dim d
        return jnp.transpose(w, (2, 0, 1)).reshape(C, H * hs)

    wq_t, wk_t, wv_t = stack(wq), stack(wk), stack(wv)
    # Fold LN1 gamma into the projection rows, LN1 beta into a qkv bias, and the softmax
    # scale into the Q columns, all in f32 before the bf16 cast.
    wqkv = jnp.concatenate([scale * (g1[:, None] * wq_t),
                            g1[:, None] * wk_t,
                            g1[:, None] * wv_t], axis=1)                   # (C, 3C)
    bqkv = jnp.concatenate([scale * (b1 @ wq_t), b1 @ wk_t, b1 @ wv_t])    # (3C,)

    wpt = jnp.transpose(wp)                 # (C, C)    y = att @ Wp^T
    w1t = jnp.transpose(w1)                 # (C, 4C)
    w1t_f = g2[:, None] * w1t               # fold LN2 gamma
    fb1_f = b2 @ w1t + fb1                  # fold LN2 beta
    w2t = jnp.transpose(w2)                 # (4C, C)

    return dict(
        n_heads=H,
        wqkv=wqkv.astype(compute_dtype),
        bqkv=bqkv.reshape(1, 3 * C).astype(jnp.float32),
        wpt=wpt.astype(compute_dtype),
        bp=bp.reshape(1, C).astype(jnp.float32),
        w1t=w1t_f.astype(compute_dtype),
        fb1=fb1_f.reshape(1, hidden).astype(jnp.float32),
        w2t=w2t.astype(compute_dtype),
        fb2=fb2.reshape(1, C).astype(jnp.float32),
    )


def block_forward(x, params, *, tq=None, hidden_chunk=512):
    B, T, C = x.shape
    H = params["n_heads"]
    hidden = params["w1t"].shape[1]
    cdt = params["wqkv"].dtype

    if tq is None:
        tq = T if T <= 256 else 256
    assert T % tq == 0, "T must be divisible by the query tile"

    cp = pltpu.CompilerParams(
        dimension_semantics=("parallel", "parallel"),
        # Conservative scoped-VMEM raise valid on v5e/v6e/v7x; size per generation for
        # production C/T (resident weights + (tq,T)/(tq,4C) activation tiles).
        vmem_limit_bytes=48 * 1024 * 1024,
    )

    # ---- kernel 1: LN1 (folded) + fused QKV projection ----
    q, kv = pl.pallas_call(
        ln1_qkv_kernel,
        out_shape=(jax.ShapeDtypeStruct((B, T, C), cdt),
                   jax.ShapeDtypeStruct((B, T, 2 * C), cdt)),
        grid_spec=pltpu.PrefetchScalarGridSpec(
            num_scalar_prefetch=0,
            grid=(B, T // tq),
            in_specs=[
                pl.BlockSpec((1, tq, C), lambda b, t: (b, t, 0)),      # x rows
                pl.BlockSpec((C, 3 * C), lambda b, t: (0, 0)),         # fused QKV weight
                pl.BlockSpec((1, 3 * C), lambda b, t: (0, 0)),         # fused QKV bias
            ],
            out_specs=[
                pl.BlockSpec((1, tq, C), lambda b, t: (b, t, 0)),      # q
                pl.BlockSpec((1, tq, 2 * C), lambda b, t: (b, t, 0)),  # k|v
            ],
        ),
        compiler_params=cp,
    )(x, params["wqkv"], params["bqkv"])

    # ---- kernel 2: causal MHA + residual + LN2 (folded) + FFN + residual ----
    kern = functools.partial(attn_ffn_kernel, n_heads=H,
                             hidden_chunk=min(hidden, hidden_chunk))
    out = pl.pallas_call(
        kern,
        out_shape=jax.ShapeDtypeStruct((B, T, C), x.dtype),
        grid_spec=pltpu.PrefetchScalarGridSpec(
            num_scalar_prefetch=0,
            grid=(B, T // tq),
            in_specs=[
                pl.BlockSpec((1, tq, C), lambda b, t: (b, t, 0)),      # x rows (residual)
                pl.BlockSpec((1, tq, C), lambda b, t: (b, t, 0)),      # q rows
                pl.BlockSpec((1, T, 2 * C), lambda b, t: (b, 0, 0)),   # full K|V of batch b
                pl.BlockSpec((C, C), lambda b, t: (0, 0)),             # Wp^T
                pl.BlockSpec((1, C), lambda b, t: (0, 0)),             # bp
                pl.BlockSpec((C, hidden), lambda b, t: (0, 0)),        # W1^T (LN2 gamma folded)
                pl.BlockSpec((1, hidden), lambda b, t: (0, 0)),        # fb1 (LN2 beta folded)
                pl.BlockSpec((hidden, C), lambda b, t: (0, 0)),        # W2^T
                pl.BlockSpec((1, C), lambda b, t: (0, 0)),             # fb2
            ],
            out_specs=pl.BlockSpec((1, tq, C), lambda b, t: (b, t, 0)),
            scratch_shapes=[pltpu.VMEM((tq, C), cdt)],                 # head-concat scratch
        ),
        compiler_params=cp,
    )(x, q, kv, params["wpt"], params["bp"], params["w1t"], params["fb1"],
      params["w2t"], params["fb2"])
    return out


# --------------------------------------------------------------------------------------
# Pure-JAX f32 reference (mirrors the PyTorch module, eval-mode dropout).
# --------------------------------------------------------------------------------------
def block_reference(x, g1, b1, wq, wk, wv, wp, bp, g2, b2, w1, fb1, w2, fb2):
    def ln(z, g, bta):
        mu = jnp.mean(z, axis=-1, keepdims=True)
        var = jnp.mean((z - mu) ** 2, axis=-1, keepdims=True)
        return (z - mu) / jnp.sqrt(var + LN_EPS) * g + bta

    B, T, C = x.shape
    H = wq.shape[0]
    scale = C ** (-0.5)
    mask = jnp.tril(jnp.ones((T, T), dtype=bool))

    xn = ln(x, g1, b1)
    outs = []
    for h in range(H):
        q = xn @ wq[h].T
        k = xn @ wk[h].T
        v = xn @ wv[h].T
        wei = (q @ jnp.swapaxes(k, -2, -1)) * scale
        wei = jnp.where(mask, wei, -jnp.inf)
        wei = jax.nn.softmax(wei, axis=-1)
        outs.append(wei @ v)
    att = jnp.concatenate(outs, axis=-1) @ wp.T + bp
    x1 = x + att
    xn2 = ln(x1, g2, b2)
    ffn = jnp.maximum(xn2 @ w1.T + fb1, 0.0) @ w2.T + fb2
    return x1 + ffn


if __name__ == "__main__":
    # Small shapes consistent with the module: n_heads * head_size == n_embed, block_size == T.
    B, T = 2, 8
    n_embed, n_heads = 32, 4
    head_size = n_embed // n_heads
    hidden = 4 * n_embed

    key = jax.random.PRNGKey(0)
    ks = jax.random.split(key, 14)
    x = jax.random.normal(ks[0], (B, T, n_embed), dtype=jnp.float32)
    g1 = 1.0 + 0.1 * jax.random.normal(ks[1], (n_embed,), dtype=jnp.float32)
    b1 = 0.1 * jax.random.normal(ks[2], (n_embed,), dtype=jnp.float32)
    wq = 0.1 * jax.random.normal(ks[3], (n_heads, head_size, n_embed), dtype=jnp.float32)
    wk = 0.1 * jax.random.normal(ks[4], (n_heads, head_size, n_embed), dtype=jnp.float32)
    wv = 0.1 * jax.random.normal(ks[5], (n_heads, head_size, n_embed), dtype=jnp.float32)
    wp = 0.1 * jax.random.normal(ks[6], (n_embed, n_embed), dtype=jnp.float32)
    bp = 0.1 * jax.random.normal(ks[7], (n_embed,), dtype=jnp.float32)
    g2 = 1.0 + 0.1 * jax.random.normal(ks[8], (n_embed,), dtype=jnp.float32)
    b2 = 0.1 * jax.random.normal(ks[9], (n_embed,), dtype=jnp.float32)
    w1 = 0.1 * jax.random.normal(ks[10], (hidden, n_embed), dtype=jnp.float32)
    fb1 = 0.1 * jax.random.normal(ks[11], (hidden,), dtype=jnp.float32)
    w2 = 0.1 * jax.random.normal(ks[12], (n_embed, hidden), dtype=jnp.float32)
    fb2 = 0.1 * jax.random.normal(ks[13], (n_embed,), dtype=jnp.float32)

    # Pack / fold / cast weights ONCE (not per forward call).
    params = pack_block_params(g1, b1, wq, wk, wv, wp, bp, g2, b2, w1, fb1, w2, fb2,
                               compute_dtype=jnp.bfloat16)

    out = block_forward(x, params)
    out = jax.block_until_ready(out)

    ref = block_reference(x, g1, b1, wq, wk, wv, wp, bp, g2, b2, w1, fb1, w2, fb2)
    assert out.shape == (B, T, n_embed)
    # bf16 MXU operands (+ approx softmax reciprocal) -> looser tolerance than pure f32.
    assert jnp.allclose(out, ref, atol=5e-2, rtol=5e-2), "mismatch vs reference"

    print("KERNEL_OK")
</pallas_src>

<mosaic_0001>
module attributes {stable_mosaic.version = 11 : i64} {
  func.func @ln1_qkv_kernel(%arg0: i32, %arg1: i32, %arg2: memref<1x8x32xf32, #tpu.memory_space<vmem>>, %arg3: memref<32x96xbf16, #tpu.memory_space<vmem>>, %arg4: memref<1x96xf32, #tpu.memory_space<vmem>>, %arg5: memref<1x8x32xbf16, #tpu.memory_space<vmem>>, %arg6: memref<1x8x64xbf16, #tpu.memory_space<vmem>>) attributes {dimension_semantics = [#tpu.dimension_semantics<parallel>, #tpu.dimension_semantics<parallel>], iteration_bounds = array<i64: 2, 1>, scalar_prefetch = 0 : i64, scratch_operands = 0 : i64, tpu.core_type = #tpu.core_type<tc>, window_params = [{transform_indices = @transform_0, window_bounds = array<i64: 1, 8, 32>}, {pipeline_mode = #tpu.pipeline_mode<synchronous>, transform_indices = @transform_1, window_bounds = array<i64: 32, 96>}, {pipeline_mode = #tpu.pipeline_mode<synchronous>, transform_indices = @transform_2, window_bounds = array<i64: 1, 96>}, {transform_indices = @transform_3, window_bounds = array<i64: 1, 8, 32>}, {transform_indices = @transform_4, window_bounds = array<i64: 1, 8, 64>}]} {
    %c0 = arith.constant 0 : index
    %c0_0 = arith.constant 0 : index
    %c0_1 = arith.constant 0 : index
    %0 = vector.load %arg2[%c0, %c0_0, %c0_1] : memref<1x8x32xf32, #tpu.memory_space<vmem>>, vector<1x8x32xf32>
    %1 = vector.shape_cast %0 : vector<1x8x32xf32> to vector<8x32xf32>
    %cst = arith.constant dense<0.000000e+00> : vector<8xf32>
    %2 = vector.multi_reduction <add>, %1, %cst [1] : vector<8x32xf32> to vector<8xf32>
    %3 = vector.shape_cast %2 : vector<8xf32> to vector<8x1xf32>
    %cst_2 = arith.constant 3.200000e+01 : f32
    %4 = vector.broadcast %cst_2 : f32 to vector<8x1xf32>
    %5 = arith.divf %3, %4 : vector<8x1xf32>
    %6 = vector.broadcast %5 : vector<8x1xf32> to vector<8x32xf32>
    %7 = arith.subf %1, %6 : vector<8x32xf32>
    %8 = arith.mulf %7, %7 : vector<8x32xf32>
    %cst_3 = arith.constant dense<0.000000e+00> : vector<8xf32>
    %9 = vector.multi_reduction <add>, %8, %cst_3 [1] : vector<8x32xf32> to vector<8xf32>
    %10 = vector.shape_cast %9 : vector<8xf32> to vector<8x1xf32>
    %cst_4 = arith.constant 3.200000e+01 : f32
    %11 = vector.broadcast %cst_4 : f32 to vector<8x1xf32>
    %12 = arith.divf %10, %11 : vector<8x1xf32>
    %cst_5 = arith.constant 9.99999974E-6 : f32
    %13 = vector.broadcast %cst_5 : f32 to vector<8x1xf32>
    %14 = arith.addf %12, %13 : vector<8x1xf32>
    %15 = math.rsqrt %14 : vector<8x1xf32>
    %16 = vector.broadcast %15 : vector<8x1xf32> to vector<8x32xf32>
    %17 = arith.mulf %7, %16 : vector<8x32xf32>
    %18 = arith.truncf %17 : vector<8x32xf32> to vector<8x32xbf16>
    %c0_6 = arith.constant 0 : index
    %c0_7 = arith.constant 0 : index
    %19 = vector.load %arg3[%c0_6, %c0_7] : memref<32x96xbf16, #tpu.memory_space<vmem>>, vector<32x96xbf16>
    %cst_8 = arith.constant dense<0.000000e+00> : vector<8x96xf32>
    %20 = tpu.matmul %18, %19, %cst_8 {dimension_numbers = #tpu.dot_dimension_numbers<[1], [0], [0], [1], [0, 0, 1, 1], [], []>} : vector<8x32xbf16>, vector<32x96xbf16>, vector<8x96xf32> -> vector<8x96xf32>
    %c0_9 = arith.constant 0 : index
    %c0_10 = arith.constant 0 : index
    %21 = vector.load %arg4[%c0_9, %c0_10] : memref<1x96xf32, #tpu.memory_space<vmem>>, vector<1x96xf32>
    %22 = vector.shape_cast %21 : vector<1x96xf32> to vector<96xf32>
    %23 = vector.shape_cast %22 : vector<96xf32> to vector<1x96xf32>
    %24 = vector.broadcast %23 : vector<1x96xf32> to vector<8x96xf32>
    %25 = arith.addf %20, %24 : vector<8x96xf32>
    %26 = arith.truncf %25 : vector<8x96xf32> to vector<8x96xbf16>
    %27 = vector.extract_strided_slice %26 {offsets = [0, 0], sizes = [8, 32], strides = [1, 1]} : vector<8x96xbf16> to vector<8x32xbf16>
    %c0_11 = arith.constant 0 : index
    %c0_12 = arith.constant 0 : index
    %c0_13 = arith.constant 0 : index
    %28 = vector.load %arg5[%c0_11, %c0_12, %c0_13] : memref<1x8x32xbf16, #tpu.memory_space<vmem>>, vector<1x8x32xbf16>
    %29 = vector.shape_cast %28 : vector<1x8x32xbf16> to vector<8x32xbf16>
    %30 = vector.shape_cast %27 : vector<8x32xbf16> to vector<1x8x32xbf16>
    tpu.vector_store %arg5[%c0_11, %c0_12, %c0_13], %30 {strides = array<i32>} : memref<1x8x32xbf16, #tpu.memory_space<vmem>>, vector<1x8x32xbf16>,
    %31 = vector.extract_strided_slice %26 {offsets = [0, 32], sizes = [8, 64], strides = [1, 1]} : vector<8x96xbf16> to vector<8x64xbf16>
    %c0_14 = arith.constant 0 : index
    %c0_15 = arith.constant 0 : index
    %c0_16 = arith.constant 0 : index
    %32 = vector.load %arg6[%c0_14, %c0_15, %c0_16] : memref<1x8x64xbf16, #tpu.memory_space<vmem>>, vector<1x8x64xbf16>
    %33 = vector.shape_cast %32 : vector<1x8x64xbf16> to vector<8x64xbf16>
    %34 = vector.shape_cast %31 : vector<8x64xbf16> to vector<1x8x64xbf16>
    tpu.vector_store %arg6[%c0_14, %c0_15, %c0_16], %34 {strides = array<i32>} : memref<1x8x64xbf16, #tpu.memory_space<vmem>>, vector<1x8x64xbf16>,
    return
  }
  func.func @transform_0(%arg0: i32, %arg1: i32) -> (i32, i32, i32) {
    %c0_i32 = arith.constant 0 : i32
    %c0_i32_0 = arith.constant 0 : i32
    return %arg0, %arg1, %c0_i32 : i32, i32, i32
  }
  func.func @transform_1(%arg0: i32, %arg1: i32) -> (i32, i32) {
    %c0_i32 = arith.constant 0 : i32
    %c0_i32_0 = arith.constant 0 : i32
    %c0_i32_1 = arith.constant 0 : i32
    return %c0_i32, %c0_i32_0 : i32, i32
  }
  func.func @transform_2(%arg0: i32, %arg1: i32) -> (i32, i32) {
    %c0_i32 = arith.constant 0 : i32
    %c0_i32_0 = arith.constant 0 : i32
    %c0_i32_1 = arith.constant 0 : i32
    return %c0_i32, %c0_i32_0 : i32, i32
  }
  func.func @transform_3(%arg0: i32, %arg1: i32) -> (i32, i32, i32) {
    %c0_i32 = arith.constant 0 : i32
    %c0_i32_0 = arith.constant 0 : i32
    return %arg0, %arg1, %c0_i32 : i32, i32, i32
  }
  func.func @transform_4(%arg0: i32, %arg1: i32) -> (i32, i32, i32) {
    %c0_i32 = arith.constant 0 : i32
    %c0_i32_0 = arith.constant 0 : i32
    return %arg0, %arg1, %c0_i32 : i32, i32, i32
  }
}

</mosaic_0001>

<bundles_post_ra>
// kernel: tpu_custom_call.1
= control target key start
LH: loop header
LB: loop body
LE: loop exit
PB: predicated region body
PF: predicated region fallthrough
CT: control target
= control target key end

     0   :  { %10 = vsyncpa [#allocation3], 0  ;;  %s1102_s0 = inlined_call_operand.hbm [shape: f32[2,8,32], index: 0, kind: input, shape index: {}]   ;;  %s1103_s1 = inlined_call_operand.hbm [shape: bf16[32,96], index: 1, kind: input, shape index: {}]   ;;  %s1104_s2 = inlined_call_operand.vmem [shape: f32[1,96], index: 2, kind: input, shape index: {}]   ;;  %s1105_s3 = inlined_call_operand.hbm [shape: bf16[2,8,32], index: 3, kind: output, shape index: {0}]   ;;  %s1106_s4 = inlined_call_operand.hbm [shape: bf16[2,8,64], index: 4, kind: output, shape index: {1}]  }
   0x1   :  { %12 = vsyncpa [#allocation3 + $0x1], 0 }
   0x2   :  { %13 = vsyncpa [#allocation6], 0 }
   0x3   :  { %14 = vsyncpa [#allocation4], 0 }
   0x4   :  { %16 = vsyncpa [#allocation4 + $0x1], 0 }
   0x5   :  { %17 = vsyncpa [#allocation9], 0 }
   0x6   :  { %19 = vsyncpa [#allocation9 + $0x1], 0  ;;  %s844_s15 = smov 0   ;;  %s846_s16 = smov 0  }
   0x7   :  { %s848_s17 = smov 0   ;;  %s850_s18 = smov 0  }
   0x8   :  { %s852_s19 = smov 0   ;;  %s854_s20 = smov 0  }
   0x9 LB: > { %s510_s21 = sadd.s32 4294967295, %s808_s20   ;;  %s511_s22 = sadd.s32 4294967294, %s808_s20   ;;  %s808_s20 = sphi %s854_s20, %s25_s20   ;;  %s804_s19 = sphi %s852_s19, %s1130_s19   ;;  %s800_s18 = sphi %s850_s18, %s1129_s18   ;;  %s796_s17 = sphi %s848_s17, %s1128_s17   ;;  %s792_s16 = sphi %s846_s16, %s1127_s16   ;;  %s788_s15 = sphi %s844_s15, %s1126_s15  }
   0xa   : > { %p59_p0 = scmp.ne.s32.totalorder %s792_s16, %s788_s15  ;;  %p878_p1 = scmp.eq.s32.totalorder %s510_s21, 0 }
   0xb   : > { %p882_p2 = scmp.eq.s32.totalorder %s510_s21, 1  ;;  %p133_p3 = scmp.eq.s32.totalorder %s511_s22, 1 }
   0xc   : > { %s1111_s23 = scalar_select %p878_p1, 1, 0 }
   0xd   : > { %s1112_s24 = scalar_select %p882_p2, 1, 0 }
   0xe   : > { %p888_p4 = por %p878_p1, %p59_p0  ;;  %p512_p5 = scmp.ge.s32.totalorder %s808_s20, 1 }
   0xf   : > { %p893_p6 = por %p133_p3, %p59_p0  ;;  %p168_p7 = scmp.lt.s32.totalorder %s808_s20, 3 }
  0x10   : > { %s1113_s25 = scalar_select %p888_p4, 1, 0 }
  0x11   : > { %s1114_s26 = scalar_select %p893_p6, 1, 0 }
  0x12   : > { %p898_p8 = pnand %p512_p5, %p168_p7  ;;  %s810_s28 = smov [#allocation5]  }
  0x13   : > { %s180_s29 = sshll.u32 %s810_s28, 4  ;;  %s37_s5 = sadd.s32 1, %s804_s19  ;;  %s181_s29 = int_to_ptr.vmem [resolvable:$true] %s180_s29 }
  0x14   : > { %s1115_s27 = scalar_select %p898_p8, 1, 0 }
  0x15   : > { %p555_p9 = pneg %p898_p8  ;;  %s632_s8 = scalar_lea.hbm %s1103_s1, 256 }
  0x16   : > { %p633_p12 = scmp.ne.s32.totalorder %s1103_s1, %s632_s8  ;;  %p639_p5 = scmp.lt.u32.totalorder %s632_s8, %s1103_s1 }
  0x17   : > { %p907_p11 = pnand %p555_p9, %p878_p1 }
  0x19   : > { %p634_p13 = pneg %p907_p11 }
  0x1b   : > { %p635_p0 = pnand %p634_p13, %p633_p12 }
  0x1d   : > { %p636_p3 = pneg %p635_p0 }
  0x1f   : > { %p641_p7 = pnand %p639_p5, %p636_p3 }
  0x21   : > { %644 = shalt.err (!%p641_p7)
}
  0x22   : > { %s645_s13 = scalar_lea.vmem %s181_s29, 256  ;;  %p653_p1 = scmp.lt.s32.totalorder %s181_s29, %s181_s29 }
  0x23   : > { %p646_p9 = scmp.ne.s32.totalorder %s181_s29, %s645_s13  ;;  %p654_p4 = scmp.lt.s32.totalorder %s645_s13, %s645_s13 }
  0x25   : > { %p648_p10 = pnand %p646_p9, %p634_p13  ;;  %p655_p8 = por %p654_p4, %p653_p1 }
  0x27   : > { %p649_p6 = pneg %p648_p10 }
  0x29   : > { %p656_p2 = pnand %p655_p8, %p649_p6 }
  0x2b   : > { %659 = shalt.err (!%p656_p2)
}
  0x2c   : > { %s811_s14 = smov 64   ;;  %s812_s21 = smov 4  }
  0x2d   : > { %558 = dma.hbm_to_vmem [thread:$0]  (!%p907_p11), %s1103_s1, 256, %s181_s29, [#allocation6], %s811_s14, %s811_s14, %s812_s21  }
  0x2e   : > { %p39_p1 = scmp.ge.s32.totalorder %s37_s5, 2  ;;  %s46_s6 = sadd.s32 1, %s796_s17 }
  0x2f   : > { %p53_p2 = scmp.ne.s32.totalorder %s796_s17, %s792_s16  ;;  %p54_p4 = scmp.eq.s32.totalorder %s808_s20, 0 }
  0x30   : > { %s1132_s5 = smov (%p39_p1, %s37_s5), 0  ;;  %p1118_p8 = scmp.ne.s32.totalorder %s1112_s24, 0 }
  0x31   : > { %p934_p6 = por %p54_p4, %p53_p2  ;;  %s41_s30 = ssub.s32 %s804_s19, %s1132_s5 }
  0x32   : > { %p940_p10 = por %p1118_p8, %p53_p2  ;;  %p571_p12 = scmp.lt.s32.totalorder %s808_s20, 2 }
  0x33   : > { %p44_p11 = scmp.eq.s32.totalorder %s41_s30, 0  ;;  %s197_s29 = sand.u32 1, %s796_s17  }
  0x34   : > { %s515_s9 = sshll.u32 %s197_s29, 3  ;;  %s516_s11 = sshll.u32 %s804_s19, 7 }
  0x35   : > { %s949_s10 = scalar_select %p44_p11, %s796_s17, %s46_s6  }
  0x36   : > { %s955_s14 = scalar_lea.hbm %s1102_s0, %s516_s11  ;;  %s201_s24 = scalar_lea.vmem [#allocation2], %s515_s9 }
  0x37   : > { %s209_s21 = sshll.u32 %s201_s24, 4  ;;  %p961_p13 = pnand %p571_p12, %p934_p6  ;;  %s957_s21 = int_to_ptr.vmem [resolvable:$true] %s209_s21 }
  0x38   : > { %s198_s28 = scalar_lea.sflag [#allocation3], %s197_s29  ;;  %s660_s6 = scalar_lea.hbm %s955_s14, 128 }
  0x39   : > { %p661_p0 = scmp.ne.s32.totalorder %s955_s14, %s660_s6  ;;  %p662_p3 = pneg %p961_p13 }
  0x3a   : > { %s665_s11 = scalar_lea.hbm %s1102_s0, 256  ;;  %p666_p9 = scmp.lt.u32.totalorder %s955_s14, %s1102_s0 }
  0x3b   : > { %p663_p5 = pnand %p662_p3, %p661_p0  ;;  %p667_p1 = scmp.lt.u32.totalorder %s665_s11, %s660_s6 }
  0x3c   : > { %p669_p4 = scmp.lt.u32.totalorder %s660_s6, %s955_s14 }
  0x3d   : > { %p664_p7 = pneg %p663_p5  ;;  %p668_p2 = por %p667_p1, %p666_p9 }
  0x3f   : > { %p670_p6 = por %p669_p4, %p668_p2 }
  0x41   : > { %p671_p8 = pnand %p670_p6, %p664_p7 }
  0x43   : > { %674 = shalt.err (!%p671_p8)
}
  0x44   : > { %s675_s29 = scalar_lea.vmem %s957_s21, 128  ;;  %s813_s13 = smov [#allocation2]  }
  0x45   : > { %p676_p12 = scmp.ne.s32.totalorder %s957_s21, %s675_s29  ;;  %s680_s24 = sshll.u32 %s813_s13, 4  ;;  %s681_s24 = int_to_ptr.vmem [resolvable:$false] %s680_s24 }
  0x46   : > { %s682_s30 = scalar_lea.vmem %s681_s24, 256  ;;  %p683_p5 = scmp.lt.s32.totalorder %s957_s21, %s681_s24 }
  0x47   : > { %p678_p11 = pnand %p676_p12, %p662_p3  ;;  %p684_p9 = scmp.lt.s32.totalorder %s682_s30, %s675_s29 }
  0x49   : > { %p679_p0 = pneg %p678_p11  ;;  %p685_p1 = por %p684_p9, %p683_p5 }
  0x4b   : > { %p686_p2 = pnand %p685_p1, %p679_p0 }
  0x4d   : > { %689 = shalt.err (!%p686_p2)
}
  0x4e   : > { %562 = dma.hbm_to_vmem [thread:$0]  (!%p961_p13), %s955_s14, 128, %s957_s21, %s198_s28  }
  0x4f   : > { %p1121_p7 = scmp.ne.s32.totalorder %s1115_s27, 0 }
  0x50   : > { %s993_s6 = sand.u32 (!%p1121_p7), 1, %s792_s16   ;;  %p1122_p3 = scmp.ne.s32.totalorder (!%p1121_p7), %s1113_s25, 0 }
  0x51   : > { %218 = sbr.rel (%p1121_p7) target bundleno = 749 (0x2ed), region = 32  ;;  %s518_s9 = sshll.u32 (!%p1121_p7), %s993_s6, 3 }
  0x52   : > { %s221_s11 = scalar_lea.sflag (!%p1121_p7), [#allocation3], %s993_s6  ;;  %s224_s7 = scalar_lea.vmem (!%p1121_p7), [#allocation2], %s518_s9 }
  0x58   : > { %771 = dma.done.wait (%p1122_p3), %s221_s11, 128  }
  0x59   : > { %773 = vsyncadd (%p1122_p3), %s221_s11, 4294967168  ;;  %p1123_p4 = scmp.ne.s32.totalorder %s1111_s23, 0 }
  0x5b   : > { %775 = dma.done.wait (%p1123_p4), [#allocation6], 256  }
  0x5c   : > { %777 = vsyncadd (%p1123_p4), [#allocation6], 4294967040  ;;  %vm260_vm0 = vcmask 261120   ;;  %v259_v0 = vld [vmem:[%s224_s7] sm:$0xff]  ;;  %v628_v7 = vld [vmem:[#allocation5] sm:$0xff]   ;;  %v814_v8 = vmov 0.0  }
  0x5d   : > { %v261_v1 = vsel %vm260_vm0, %v259_v0, 0.0  ;;  %537 = vmatprep.subr.bf16.mxu0 %v814_v8  ;;  %vm815_vm1 = vmmov 0   ;;  %v629_v9 = vld [vmem:[#allocation5 + $0x8] sm:$0xff]   ;;  %s520_s23 = sshll.u32 %s993_s6, 2  ;;  %v522_v16 = vld [vmem:[%s1104_s2] ss:$0 sm:$0xff] }
  0x5e   : > { %262 = vadd.xlane.f32.xlu0 %v261_v1  ;;  %541 = vmatprep.mubr.msk.bf16.mxu0 %vm815_vm1, %v814_v8  ;;  %s529_s14 = sshll.u32 %s800_s18, 6  ;;  %s250_s21 = scalar_lea.vmem [#allocation7], %s520_s23  ;;  %vm343_vm2 = vcmask 257024  }
  0x5f   : > { %538 = vmatpush3.bf16.msra.mxu0 %v628_v7  ;;  %s373_s22 = sshll.u32 %s250_s21, 4  ;;  %s1020_s29 = scalar_lea.hbm %s1105_s3, %s529_s14  ;;  %s1022_s22 = int_to_ptr.vmem [resolvable:$true] %s373_s22 }
  0x60   : > { %539 = vmatprep.subr.bf16.mxu0 %v814_v8  ;;  %s816_s13 = smov 96   ;;  %s354_s24 = scalar_lea.sflag [#allocation4], %s993_s6 }
  0x61   : > { %s690_s30 = scalar_lea.vmem %s1022_s22, 64  ;;  %s817_s9 = smov [#allocation7]  }
  0x62   : > { %p691_p13 = scmp.ne.s32.totalorder %s1022_s22, %s690_s30  ;;  %s694_s11 = sshll.u32 %s817_s9, 4  ;;  %s695_s11 = int_to_ptr.vmem [resolvable:$false] %s694_s11 }
  0x63   : > { %540 = vmatpush3.bf16.msra.mxu0 %v629_v9  ;;  %s696_s7 = scalar_lea.vmem %s695_s11, 128  ;;  %p697_p12 = scmp.lt.s32.totalorder %s1022_s22, %s695_s11 }
  0x64   : > { %p692_p6 = pnand %p691_p13, %p940_p10  ;;  %p698_p11 = scmp.lt.s32.totalorder %s696_s7, %s690_s30 }
  0x66   : > { %p693_p8 = pneg %p692_p6  ;;  %p699_p0 = por %p698_p11, %p697_p12 }
  0x68   : > { %p700_p5 = pnand %p699_p0, %p693_p8 }
  0xeb   : > { %v263_v2 = vpop.xlane.xlu0 %262 }
  0xec   : > { %v265_v3 = vmul.f32 0.03125, %v263_v2 }
  0xee   : > { %v266_v4 = vsub.f32 %v259_v0, %v265_v3 }
  0xf0   : > { %v267_v5 = vmul.f32 %v266_v4, %v266_v4 }
  0xf2   : > { %v268_v6 = vsel %vm260_vm0, %v267_v5, 0.0 }
  0xf3   : > { %269 = vadd.xlane.f32.xlu0 %v268_v6 }
 0x180   : > { %v270_v10 = vpop.xlane.xlu0 %269 }
 0x181   : > { %v271_v11 = vmul.f32 0.03125, %v270_v10 }
 0x183   : > { %v272_v12 = vadd.f32 1e-05, %v271_v11 }
 0x185   : > { %630 = vrsqrt.f32 %v272_v12 }
 0x18f   : > { %v631_v13 = vpop.eup %630 }
 0x190   : > { %v274_v14 = vmul.f32 %v631_v13, %v266_v4 }
 0x192   : > { %v275_v15 = vpack.c.bf16 %v274_v14, %v274_v14 }
 0x194   : > { %542 = vmatmul.mubr.msk.bf16.vlgmr.msra.gmra.mrb[0].mxu0 %vm260_vm0, %v275_v15 }
 0x267   : > { %v336_v17 = vpop.f32.mrb[0].mxu0 }
 0x268   : > { %v337_v18 = vadd.f32 %v522_v16, %v336_v17  ;;  %v543_v19 = vpop.f32.mrb[1].mxu0 }
 0x269   : > { %v339_v20 = vpop.f32.mrb[2].mxu0 }
 0x26a   : > { %v342_v21 = vpack.c.bf16 %v337_v18, %v337_v18  ;;  %v544_v22 = vpop.f32.mrb[3].mxu0 }
 0x26c   : > { %348 = vrot.lane.b32.xlu1 %v342_v21, %s816_s13  ;;  %344 = vst.msk [vmem:[%s250_s21] sm:$0xf] %vm343_vm2, %v342_v21 }
 0x26d   : > { %703 = shalt.err (!%p700_p5)
}
 0x26e   : > { %s704_s25 = scalar_lea.hbm %s1020_s29, 64  ;;  %s708_s28 = scalar_lea.hbm %s1105_s3, 128 }
 0x26f   : > { %p705_p9 = scmp.ne.s32.totalorder %s1020_s29, %s704_s25  ;;  %p709_p7 = scmp.lt.u32.totalorder %s1020_s29, %s1105_s3 }
 0x270   : > { %p710_p3 = scmp.lt.u32.totalorder %s708_s28, %s704_s25  ;;  %p712_p13 = scmp.lt.u32.totalorder %s704_s25, %s1020_s29 }
 0x271   : > { %p706_p1 = pnand %p705_p9, %p940_p10 }
 0x272   : > { %p711_p4 = por %p710_p3, %p709_p7 }
 0x273   : > { %p707_p2 = pneg %p706_p1 }
 0x274   : > { %p713_p6 = por %p712_p13, %p711_p4 }
 0x276   : > { %p714_p8 = pnand %p713_p6, %p707_p2 }
 0x278   : > { %717 = shalt.err (!%p714_p8)
}
 0x279   : > { %551 = dma.vmem_to_hbm [thread:$0]  (%p940_p10), %s1022_s22, 64, %s1020_s29, %s354_s24   ;;  %vm351_vm3 = vcmask 519168  }
 0x27a   : > { %s257_s30 = scalar_lea.vmem [#allocation8], %s520_s23  ;;  %s1053_s25 = scalar_lea.hbm %s1106_s4, %s529_s14 }
 0x27b   : > { %s387_s9 = sshll.u32 %s257_s30, 4  ;;  %s359_s27 = scalar_lea.sflag [#allocation9], %s993_s6  ;;  %s1055_s9 = int_to_ptr.vmem [resolvable:$true] %s387_s9 }
 0x27c   : > { %s718_s21 = scalar_lea.vmem %s1055_s9, 64  ;;  %s818_s23 = smov [#allocation8]  }
 0x27d   : > { %p719_p12 = scmp.ne.s32.totalorder %s1055_s9, %s718_s21  ;;  %s722_s18 = sshll.u32 %s818_s23, 4  ;;  %s723_s18 = int_to_ptr.vmem [resolvable:$false] %s722_s18 }
 0x27e   : > { %s724_s22 = scalar_lea.vmem %s723_s18, 128  ;;  %p725_p5 = scmp.lt.s32.totalorder %s1055_s9, %s723_s18 }
 0x27f   : > { %p720_p11 = pnand %p719_p12, %p940_p10  ;;  %p726_p9 = scmp.lt.s32.totalorder %s724_s22, %s718_s21 }
 0x281   : > { %p721_p0 = pneg %p720_p11  ;;  %p727_p1 = por %p726_p9, %p725_p5 }
 0x283   : > { %p728_p2 = pnand %p727_p1, %p721_p0 }
 0x2de   : > { %v349_v23 = vpop.permute.xlu1 %348 }
 0x2df   : > { %352 = vst.msk [vmem:[%s257_s30] sm:$0xf] %vm351_vm3, %v349_v23 }
 0x2e0   : > { %731 = shalt.err (!%p728_p2)
}
 0x2e1   : > { %s732_s6 = scalar_lea.hbm %s1053_s25, 64  ;;  %s736_s24 = scalar_lea.hbm %s1106_s4, 128 }
 0x2e2   : > { %p733_p7 = scmp.ne.s32.totalorder %s1053_s25, %s732_s6  ;;  %p737_p13 = scmp.lt.u32.totalorder %s1053_s25, %s1106_s4 }
 0x2e3   : > { %p738_p6 = scmp.lt.u32.totalorder %s736_s24, %s732_s6  ;;  %p740_p12 = scmp.lt.u32.totalorder %s732_s6, %s1053_s25 }
 0x2e4   : > { %p734_p3 = pnand %p733_p7, %p940_p10 }
 0x2e5   : > { %p739_p8 = por %p738_p6, %p737_p13 }
 0x2e6   : > { %p735_p4 = pneg %p734_p3 }
 0x2e7   : > { %p741_p11 = por %p740_p12, %p739_p8 }
 0x2e9   : > { %p742_p0 = pnand %p741_p11, %p735_p4 }
 0x2eb   : > { %745 = shalt.err (!%p742_p0)
}
 0x2ec   : > { %552 = dma.vmem_to_hbm [thread:$0]  (%p940_p10), %s1055_s9, 64, %s1053_s25, %s359_s27  }
 0x2ed PF: > { %s399_s13 = sand.u32 1, %s788_s15   ;;  %p1124_p5 = scmp.ne.s32.totalorder %s1114_s26, 0 }
 0x2ee   : > { %p1125_p9 = scmp.ge.s32.totalorder %s808_s20, 2  ;;  %s400_s30 = scalar_lea.sflag [#allocation4], %s399_s13 }
 0x2f0   : > { %p564_p1 = pnand %p1125_p9, %p1124_p5 }
 0x2f2   : > { %779 = dma.done.wait (!%p564_p1), %s400_s30, 64  }
 0x2f3   : > { %781 = vsyncadd (!%p564_p1), %s400_s30, 4294967232  ;;  %s409_s11 = scalar_lea.sflag [#allocation9], %s399_s13 }
 0x2f4   : > { %783 = dma.done.wait (!%p564_p1), %s409_s11, 64  }
 0x2f5   : > { %785 = vsyncadd (!%p564_p1), %s409_s11, 4294967232  ;;  %s25_s20 = sadd.s32 1, %s808_s20   ;;  %s1126_s15 = smov %s792_s16 }
 0x2f6   : > { %p22_p2 = scmp.ge.s32.totalorder %s25_s20, 4   ;;  %s1127_s16 = smov %s796_s17 }
 0x2f7   : > { %s1128_s17 = smov %s949_s10  ;;  %s1129_s18 = smov %s804_s19 }
 0x2f8   : > { %s1130_s19 = smov %s1132_s5  ;;  %24 = sbr.rel (!%p22_p2) target bundleno = 9 (0x9), region = 98 }
 0x2ff   :  { %414 = vsyncpa [#allocation3], 1 }
 0x300   :  { %416 = vsyncpa [#allocation3 + $0x1], 1 }
 0x301   :  { %417 = vsyncpa [#allocation6], 1 }
 0x302   :  { %418 = vsyncpa [#allocation4], 1 }
 0x303   :  { %420 = vsyncpa [#allocation4 + $0x1], 1 }
 0x304   :  { %421 = vsyncpa [#allocation9], 1 }
 0x305   :  { %423 = vsyncpa [#allocation9 + $0x1], 1 }

</bundles_post_ra>
